<compile_context>
chip_gen: v5e
topology: v5e:2x2
jax: 0.10.0
libtpu: 0.0.40
codegen_flags: <defaults>
</compile_context>

<pallas_src>
import functools

import jax
import jax.numpy as jnp
from jax.experimental import pallas as pl
from jax.experimental.pallas import tpu as pltpu


def _round_up(x, m):
    return ((x + m - 1) // m) * m


def _make_kernel(B, T, TB, TT, ACC_W, need_row_mask, need_col_mask):
    n_full = TT // ACC_W
    rem = TT - n_full * ACC_W

    def kernel(seq_ref, logp_ref, rew_ref, num_ref, den_ref, acc_num, acc_den):
        b = pl.program_id(0)
        t = pl.program_id(1)

        # Reset the per-batch-tile accumulators at the first time step.
        @pl.when(t == 0)
        def _init():
            acc_num[...] = jnp.zeros_like(acc_num)
            acc_den[...] = jnp.zeros_like(acc_den)

        seq = seq_ref[...]                            # (TB, TT) int32
        logp = logp_ref[...].astype(jnp.float32)      # (TB, TT) f32

        def accumulate(valid):
            # Fold the (TB, TT) tile into the TT-independent (TB, ACC_W)
            # accumulators via lane-aligned static slices.  jnp.where keeps
            # garbage/NaN from padded regions out of the numerator; the
            # denominator is just the mask cast (valid is already bounds-safe).
            masked_lp = jnp.where(valid, logp, 0.0)
            valid_f = valid.astype(jnp.float32)
            for k in range(n_full):
                sl = slice(k * ACC_W, (k + 1) * ACC_W)
                acc_num[...] += masked_lp[:, sl]
                acc_den[...] += valid_f[:, sl]
            if rem:
                sl = slice(n_full * ACC_W, TT)
                acc_num[:, :rem] += masked_lp[:, sl]
                acc_den[:, :rem] += valid_f[:, sl]

        if not (need_row_mask or need_col_mask):
            accumulate(seq >= 0)
        else:
            # Only edge tiles pay for the iota bounds masks.
            is_edge = None
            if need_col_mask:
                is_edge = t == pl.num_programs(1) - 1
            if need_row_mask:
                e = b == pl.num_programs(0) - 1
                is_edge = e if is_edge is None else (is_edge | e)

            @pl.when(is_edge)
            def _edge_tile():
                valid = seq >= 0
                if need_col_mask:
                    col = t * TT + jax.lax.broadcasted_iota(jnp.int32, (TB, TT), 1)
                    valid = valid & (col < T)
                if need_row_mask:
                    row = b * TB + jax.lax.broadcasted_iota(jnp.int32, (TB, TT), 0)
                    valid = valid & (row < B)
                accumulate(valid)

            @pl.when(jnp.logical_not(is_edge))
            def _interior_tile():
                accumulate(seq >= 0)

        # Finalize this batch tile: apply rewards once per row, one cross-lane
        # reduce, broadcast the scalar partials into lane-dense output blocks.
        @pl.when(t == pl.num_programs(1) - 1)
        def _finalize():
            rew = rew_ref[...]                        # (TB, 1) f32
            if need_row_mask:
                row = b * TB + jax.lax.broadcasted_iota(jnp.int32, (TB, 1), 0)
                rew = jnp.where(row < B, rew, 0.0)    # kill garbage pad rows
            num = jnp.sum(acc_num[...] * rew)
            den = jnp.sum(acc_den[...])
            num_ref[...] = jnp.full(num_ref.shape, num, dtype=jnp.float32)
            den_ref[...] = jnp.full(den_ref.shape, den, dtype=jnp.float32)

    return kernel


@functools.partial(jax.jit, static_argnames=("tb_max", "tt_max"))
def reward_criterion_topic(seq, logP, rewards, *, tb_max=512, tt_max=2048):
    """seq: (B, T) int, logP: (B, T) float, rewards: (B,) float -> scalar loss."""
    B, T = seq.shape
    seq = seq.astype(jnp.int32)
    # Keep bf16 logP as-is (saves HBM traffic on v5e); upcast in-kernel.
    if logP.dtype not in (jnp.float32, jnp.bfloat16):
        logP = logP.astype(jnp.float32)
    rew2d = rewards.reshape(B, 1).astype(jnp.float32)

    # Sublane granularity (bf16 packs 2 rows per sublane).
    sub = 16 if logP.dtype == jnp.bfloat16 else 8
    assert tb_max % sub == 0 and tt_max % 128 == 0

    # Batch tile: clamp so nb >= 2 whenever B allows it (keeps both v7x
    # TensorCores busy on the "parallel" grid axis); full dim for tiny B.
    if B <= sub:
        TB = B
    else:
        TB = min(tb_max, max(sub, _round_up(pl.cdiv(B, 2), sub)))
    TT = T if T <= tt_max else tt_max
    ACC_W = min(TT, 128)

    nb = pl.cdiv(B, TB)
    nt = pl.cdiv(T, TT)
    need_row_mask = (nb * TB != B)
    need_col_mask = (nt * TT != T)

    kernel = _make_kernel(B, T, TB, TT, ACC_W, need_row_mask, need_col_mask)

    # Scoped-VMEM budget: double-buffered seq+logP tiles dominate (accumulators
    # are TT-independent and tiny).  v5e's default scoped limit is only 16 MiB,
    # so set it explicitly; capped at 48 MiB to stay safe on v7x (64 MiB/TC).
    logp_bytes = jnp.dtype(logP.dtype).itemsize
    approx = 2 * TB * TT * (4 + logp_bytes) + 2 * TB * ACC_W * 4 + (2 << 20)
    vmem_limit = int(min(max(2 * approx, 32 << 20), 48 << 20))

    num_out, den_out = pl.pallas_call(
        kernel,
        out_shape=(
            jax.ShapeDtypeStruct((nb, 1, 128), jnp.float32),  # partial num / batch tile
            jax.ShapeDtypeStruct((nb, 1, 128), jnp.float32),  # partial den / batch tile
        ),
        grid_spec=pltpu.PrefetchScalarGridSpec(
            num_scalar_prefetch=0,
            grid=(nb, nt),                                    # reduction axis last
            in_specs=[
                pl.BlockSpec((TB, TT), lambda b, t: (b, t)),  # seq
                pl.BlockSpec((TB, TT), lambda b, t: (b, t)),  # logP
                pl.BlockSpec((TB, 1), lambda b, t: (b, 0)),   # rewards follows batch tile
            ],
            out_specs=(
                pl.BlockSpec((1, 1, 128), lambda b, t: (b, 0, 0)),
                pl.BlockSpec((1, 1, 128), lambda b, t: (b, 0, 0)),
            ),
            scratch_shapes=[
                pltpu.VMEM((TB, ACC_W), jnp.float32),  # masked-logP accumulator
                pltpu.VMEM((TB, ACC_W), jnp.float32),  # mask-count accumulator
            ],
        ),
        compiler_params=pltpu.CompilerParams(
            dimension_semantics=("parallel", "arbitrary"),
            vmem_limit_bytes=vmem_limit,
        ),
    )(seq, logP, rew2d)

    # Tiny cross-batch-tile reduction + divide in the wrapper.  Partial-sum
    # order differs from a single global sum, so parity with the reference is
    # at allclose tolerance (matches PyTorch's float-mask behaviour otherwise).
    num = jnp.sum(num_out[:, 0, 0])
    den = jnp.sum(den_out[:, 0, 0])
    return -num / den


def _reference(seq, logP, rewards):
    mask = (seq >= 0).astype(jnp.float32)
    rew = rewards.reshape(-1, 1).astype(jnp.float32)
    return jnp.sum(-logP.astype(jnp.float32) * rew * mask) / jnp.sum(mask)


if __name__ == "__main__":
    key = jax.random.PRNGKey(0)

    # --- Test 1: small shapes matching the module spec (single tile). ---
    k1, k2, k3 = jax.random.split(key, 3)
    B, T = 2, 8
    seq = jax.random.randint(k1, (B, T), minval=-2, maxval=10).astype(jnp.int32)
    logP = -jax.nn.softplus(jax.random.normal(k2, (B, T), dtype=jnp.float32))
    rewards = jax.random.normal(k3, (B,), dtype=jnp.float32)

    loss = jax.block_until_ready(reward_criterion_topic(seq, logP, rewards))
    ref = _reference(seq, logP, rewards)
    assert jnp.allclose(loss, ref, rtol=1e-5, atol=1e-6), (loss, ref)

    # --- Test 2: tiled grid + ragged row/col edges (forced small tiles). ---
    k4, k5, k6 = jax.random.split(jax.random.PRNGKey(1), 3)
    B2, T2 = 12, 300
    seq2 = jax.random.randint(k4, (B2, T2), minval=-3, maxval=50).astype(jnp.int32)
    logP2 = -jax.nn.softplus(jax.random.normal(k5, (B2, T2), dtype=jnp.float32))
    rewards2 = jax.random.normal(k6, (B2,), dtype=jnp.float32)

    loss2 = jax.block_until_ready(
        reward_criterion_topic(seq2, logP2, rewards2, tb_max=8, tt_max=128))
    ref2 = _reference(seq2, logP2, rewards2)
    assert jnp.allclose(loss2, ref2, rtol=1e-5, atol=1e-6), (loss2, ref2)

    # --- Test 3: default tiles; exercises nb=2 clamp, ragged rows, and the
    #     non-128-aligned remainder chunk in the folded accumulators. ---
    loss3 = jax.block_until_ready(reward_criterion_topic(seq2, logP2, rewards2))
    assert jnp.allclose(loss3, ref2, rtol=1e-5, atol=1e-6), (loss3, ref2)

    print("KERNEL_OK")
</pallas_src>

<mosaic_0001>
module attributes {stable_mosaic.version = 11 : i64} {
  func.func @kernel(%arg0: i32, %arg1: i32, %arg2: memref<2x8xi32, #tpu.memory_space<vmem>>, %arg3: memref<2x8xf32, #tpu.memory_space<vmem>>, %arg4: memref<2x1xf32, #tpu.memory_space<vmem>>, %arg5: memref<1x1x128xf32, #tpu.memory_space<vmem>>, %arg6: memref<1x1x128xf32, #tpu.memory_space<vmem>>, %arg7: memref<2x8xf32, #tpu.memory_space<vmem>>, %arg8: memref<2x8xf32, #tpu.memory_space<vmem>>) attributes {dimension_semantics = [#tpu.dimension_semantics<parallel>, #tpu.dimension_semantics<arbitrary>], iteration_bounds = array<i64: 1, 1>, scalar_prefetch = 0 : i64, scratch_operands = 2 : i64, tpu.core_type = #tpu.core_type<tc>, window_params = [{transform_indices = @transform_0, window_bounds = array<i64: 2, 8>}, {transform_indices = @transform_1, window_bounds = array<i64: 2, 8>}, {transform_indices = @transform_2, window_bounds = array<i64: 2, 1>}, {transform_indices = @transform_3, window_bounds = array<i64: 1, 1, 128>}, {transform_indices = @transform_4, window_bounds = array<i64: 1, 1, 128>}]} {
    %c0_i32 = arith.constant 0 : i32
    %0 = arith.cmpi eq, %arg1, %c0_i32 : i32
    %1 = arith.extui %0 : i1 to i32
    %c0_i32_0 = arith.constant 0 : i32
    %2 = arith.cmpi ne, %1, %c0_i32_0 : i32
    scf.if %2 {
      %cst_15 = arith.constant 0.000000e+00 : f32
      %20 = vector.broadcast %cst_15 : f32 to vector<2x8xf32>
      %c0_16 = arith.constant 0 : index
      %c0_17 = arith.constant 0 : index
      %21 = vector.load %arg7[%c0_16, %c0_17] : memref<2x8xf32, #tpu.memory_space<vmem>>, vector<2x8xf32>
      tpu.vector_store %arg7[%c0_16, %c0_17], %20 {strides = array<i32>} : memref<2x8xf32, #tpu.memory_space<vmem>>, vector<2x8xf32>,
      %cst_18 = arith.constant 0.000000e+00 : f32
      %22 = vector.broadcast %cst_18 : f32 to vector<2x8xf32>
      %c0_19 = arith.constant 0 : index
      %c0_20 = arith.constant 0 : index
      %23 = vector.load %arg8[%c0_19, %c0_20] : memref<2x8xf32, #tpu.memory_space<vmem>>, vector<2x8xf32>
      tpu.vector_store %arg8[%c0_19, %c0_20], %22 {strides = array<i32>} : memref<2x8xf32, #tpu.memory_space<vmem>>, vector<2x8xf32>,
    } else {
    }
    %c0 = arith.constant 0 : index
    %c0_1 = arith.constant 0 : index
    %3 = vector.load %arg2[%c0, %c0_1] : memref<2x8xi32, #tpu.memory_space<vmem>>, vector<2x8xi32>
    %c0_2 = arith.constant 0 : index
    %c0_3 = arith.constant 0 : index
    %4 = vector.load %arg3[%c0_2, %c0_3] : memref<2x8xf32, #tpu.memory_space<vmem>>, vector<2x8xf32>
    %c0_i32_4 = arith.constant 0 : i32
    %5 = vector.broadcast %c0_i32_4 : i32 to vector<2x8xi32>
    %6 = arith.cmpi sge, %3, %5 : vector<2x8xi32>
    %cst = arith.constant 0.000000e+00 : f32
    %7 = vector.broadcast %cst : f32 to vector<2x8xf32>
    %8 = arith.select %6, %4, %7 : vector<2x8xi1>, vector<2x8xf32>
    %9 = arith.extui %6 : vector<2x8xi1> to vector<2x8xi32>
    %10 = arith.sitofp %9 : vector<2x8xi32> to vector<2x8xf32>
    %c0_5 = arith.constant 0 : index
    %c0_6 = arith.constant 0 : index
    %11 = vector.load %arg7[%c0_5, %c0_6] : memref<2x8xf32, #tpu.memory_space<vmem>>, vector<2x8xf32>
    %12 = arith.addf %11, %8 : vector<2x8xf32>
    %c0_7 = arith.constant 0 : index
    %c0_8 = arith.constant 0 : index
    %13 = vector.load %arg7[%c0_7, %c0_8] : memref<2x8xf32, #tpu.memory_space<vmem>>, vector<2x8xf32>
    tpu.vector_store %arg7[%c0_7, %c0_8], %12 {strides = array<i32>} : memref<2x8xf32, #tpu.memory_space<vmem>>, vector<2x8xf32>,
    %c0_9 = arith.constant 0 : index
    %c0_10 = arith.constant 0 : index
    %14 = vector.load %arg8[%c0_9, %c0_10] : memref<2x8xf32, #tpu.memory_space<vmem>>, vector<2x8xf32>
    %15 = arith.addf %14, %10 : vector<2x8xf32>
    %c0_11 = arith.constant 0 : index
    %c0_12 = arith.constant 0 : index
    %16 = vector.load %arg8[%c0_11, %c0_12] : memref<2x8xf32, #tpu.memory_space<vmem>>, vector<2x8xf32>
    tpu.vector_store %arg8[%c0_11, %c0_12], %15 {strides = array<i32>} : memref<2x8xf32, #tpu.memory_space<vmem>>, vector<2x8xf32>,
    %c0_i32_13 = arith.constant 0 : i32
    %17 = arith.cmpi eq, %arg1, %c0_i32_13 : i32
    %18 = arith.extui %17 : i1 to i32
    %c0_i32_14 = arith.constant 0 : i32
    %19 = arith.cmpi ne, %18, %c0_i32_14 : i32
    scf.if %19 {
      %c0_15 = arith.constant 0 : index
      %c0_16 = arith.constant 0 : index
      %20 = vector.load %arg4[%c0_15, %c0_16] : memref<2x1xf32, #tpu.memory_space<vmem>>, vector<2x1xf32>
      %c0_17 = arith.constant 0 : index
      %c0_18 = arith.constant 0 : index
      %21 = vector.load %arg7[%c0_17, %c0_18] : memref<2x8xf32, #tpu.memory_space<vmem>>, vector<2x8xf32>
      %22 = vector.broadcast %20 : vector<2x1xf32> to vector<2x8xf32>
      %23 = arith.mulf %21, %22 : vector<2x8xf32>
      %24 = vector.shape_cast %23 : vector<2x8xf32> to vector<1x2x8xf32>
      %cst_19 = arith.constant dense<0.000000e+00> : vector<1xf32>
      %25 = vector.multi_reduction <add>, %24, %cst_19 [1, 2] : vector<1x2x8xf32> to vector<1xf32>
      %26 = vector.shape_cast %25 : vector<1xf32> to vector<1x1x1xf32>
      %27 = vector.extract %26[0, 0, 0] : f32 from vector<1x1x1xf32>
      %c0_20 = arith.constant 0 : index
      %c0_21 = arith.constant 0 : index
      %28 = vector.load %arg8[%c0_20, %c0_21] : memref<2x8xf32, #tpu.memory_space<vmem>>, vector<2x8xf32>
      %29 = vector.shape_cast %28 : vector<2x8xf32> to vector<1x2x8xf32>
      %cst_22 = arith.constant dense<0.000000e+00> : vector<1xf32>
      %30 = vector.multi_reduction <add>, %29, %cst_22 [1, 2] : vector<1x2x8xf32> to vector<1xf32>
      %31 = vector.shape_cast %30 : vector<1xf32> to vector<1x1x1xf32>
      %32 = vector.extract %31[0, 0, 0] : f32 from vector<1x1x1xf32>
      %33 = vector.broadcast %27 : f32 to vector<1x1x128xf32>
      %c0_23 = arith.constant 0 : index
      %c0_24 = arith.constant 0 : index
      %c0_25 = arith.constant 0 : index
      %34 = vector.load %arg5[%c0_23, %c0_24, %c0_25] : memref<1x1x128xf32, #tpu.memory_space<vmem>>, vector<1x1x128xf32>
      tpu.vector_store %arg5[%c0_23, %c0_24, %c0_25], %33 {strides = array<i32>} : memref<1x1x128xf32, #tpu.memory_space<vmem>>, vector<1x1x128xf32>,
      %35 = vector.broadcast %32 : f32 to vector<1x1x128xf32>
      %c0_26 = arith.constant 0 : index
      %c0_27 = arith.constant 0 : index
      %c0_28 = arith.constant 0 : index
      %36 = vector.load %arg6[%c0_26, %c0_27, %c0_28] : memref<1x1x128xf32, #tpu.memory_space<vmem>>, vector<1x1x128xf32>
      tpu.vector_store %arg6[%c0_26, %c0_27, %c0_28], %35 {strides = array<i32>} : memref<1x1x128xf32, #tpu.memory_space<vmem>>, vector<1x1x128xf32>,
    } else {
    }
    return
  }
  func.func @transform_0(%arg0: i32, %arg1: i32) -> (i32, i32) {
    %c0_i32 = arith.constant 0 : i32
    return %arg0, %arg1 : i32, i32
  }
  func.func @transform_1(%arg0: i32, %arg1: i32) -> (i32, i32) {
    %c0_i32 = arith.constant 0 : i32
    return %arg0, %arg1 : i32, i32
  }
  func.func @transform_2(%arg0: i32, %arg1: i32) -> (i32, i32) {
    %c0_i32 = arith.constant 0 : i32
    %c0_i32_0 = arith.constant 0 : i32
    return %arg0, %c0_i32 : i32, i32
  }
  func.func @transform_3(%arg0: i32, %arg1: i32) -> (i32, i32, i32) {
    %c0_i32 = arith.constant 0 : i32
    %c0_i32_0 = arith.constant 0 : i32
    %c0_i32_1 = arith.constant 0 : i32
    return %arg0, %c0_i32, %c0_i32_0 : i32, i32, i32
  }
  func.func @transform_4(%arg0: i32, %arg1: i32) -> (i32, i32, i32) {
    %c0_i32 = arith.constant 0 : i32
    %c0_i32_0 = arith.constant 0 : i32
    %c0_i32_1 = arith.constant 0 : i32
    return %arg0, %c0_i32, %c0_i32_0 : i32, i32, i32
  }
}

</mosaic_0001>

<bundles_post_ra>
// kernel: reward_criterion_topic.1
= control target key start
LH: loop header
LB: loop body
LE: loop exit
PB: predicated region body
PF: predicated region fallthrough
CT: control target
= control target key end

     0   :  { %10 = vsyncpa [#allocation5], 0  ;;  %s130_s18 = smov [#allocation4]   ;;  %s179_s0 = inlined_call_operand.vmem [shape: s32[2,8], index: 0, kind: input, shape index: {}]   ;;  %s180_s1 = inlined_call_operand.hbm [shape: f32[2,8], index: 1, kind: input, shape index: {}]   ;;  %s181_s2 = inlined_call_operand.vmem [shape: f32[2,1], index: 2, kind: input, shape index: {}]   ;;  %s182_s3 = inlined_call_operand.vmem [shape: f32[1,1,128], index: 3, kind: output, shape index: {0}]   ;;  %s183_s4 = inlined_call_operand.vmem [shape: f32[1,1,128], index: 4, kind: output, shape index: {1}]  }
   0x1   :  { %s18_s17 = sshll.u32 %s180_s1, 4  ;;  %s20_s19 = sshll.u32 %s130_s18, 4  ;;  %s19_s17 = int_to_ptr.hbm [resolvable:$true] %s18_s17  ;;  %s21_s19 = int_to_ptr.vmem [resolvable:$true] %s20_s19 }
   0x2   :  { %23 = dma.hbm_to_vmem [thread:$0]  %s19_s17, 32, %s21_s19, [#allocation5]  }
   0x3   :  { %128 = dma.done.wait [#allocation5], 32  }
   0x4   :  { %129 = vsyncadd [#allocation5], 4294967264  ;;  %vm34_vm0 = vcmask 58368   ;;  %v131_v0 = vmov 0   ;;  %v132_v1 = vmov 0.0  }
   0x5   :  { %103 = vset.pattern.permute.xlu0 %v131_v0  ;;  %36 = vst.msk [vmem:[#allocation3] sm:$0x3] %vm34_vm0, %v132_v1  ;;  %v53_v2 = vld [vmem:[%s181_s2] sm:$0x3]  ;;  %v38_v4 = vld [vmem:[#allocation4] sm:$0x3] }
   0x6   :  { %35 = vst.msk [vmem:[#allocation2] sm:$0x3] %vm34_vm0, %v132_v1  ;;  %v37_v3 = vld [vmem:[%s179_s0] sm:$0x3]  ;;  %57 = vperm.xlu0 %103, %v53_v2  }
   0x7   :  { %vm39_vm1 = vcmp.ge.s32.totalorder %v37_v3, 0 }
   0x8   :  { %v40_v6 = vsel %vm39_vm1, %v38_v4, 0.0  ;;  %v95_v7 = vsel %vm39_vm1, 1.0, %v132_v1 }
   0xc   :  { %v47_v5 = vld [vmem:[#allocation3] sm:$0x3] }
   0xd   :  { %v43_v8 = vld [vmem:[#allocation2] sm:$0x3]  ;;  %v48_v9 = vadd.f32 %v95_v7, %v47_v5 }
   0xe   :  { %v44_v10 = vadd.f32 %v43_v8, %v40_v6 }
   0xf   :  { %49 = vst.msk [vmem:[#allocation3] sm:$0x3] %vm34_vm0, %v48_v9 }
  0x10   :  { %46 = vst.msk [vmem:[#allocation2] sm:$0x3] %vm34_vm0, %v44_v10 }
  0x16   :  { %v71_v11 = vld [vmem:[#allocation3] sm:$0x3] }
  0x17   :  { %v72_v12 = vsel %vm34_vm0, %v71_v11, 0.0  ;;  %v54_v13 = vld [vmem:[#allocation2] sm:$0x3] }
  0x18   :  { %73 = vadd.xlane.f32.xlu1 %v72_v12 }
  0x78   :  { %v58_v14 = vpop.permute.xlu0 %57 }
  0x79   :  { %v60_v15 = vmul.f32 %v58_v14, %v54_v13 }
  0x7b   :  { %v61_v16 = vsel %vm34_vm0, %v60_v15, 0.0 }
  0x7c   :  { %62 = vadd.xlane.f32.xlu0 %v61_v16 }
  0x8b   :  { %v74_v17 = vpop.xlane.xlu1 %73 }
  0x8c   :  { %v75_v18 = vrot.slane %v74_v17, 4 }
  0x8e   :  { %v76_v19 = vadd.f32 %v75_v18, %v74_v17 }
  0x90   :  { %v77_v20 = vrot.slane %v76_v19, 2 }
  0x92   :  { %v78_v24 = vadd.f32 %v77_v20, %v76_v19 }
  0x94   :  { %v79_v27 = vrot.slane %v78_v24, 1 }
  0x96   :  { %v80_v30 = vadd.f32 %v79_v27, %v78_v24 }
  0xef   :  { %v63_v21 = vpop.xlane.xlu0 %62 }
  0xf0   :  { %v64_v22 = vrot.slane %v63_v21, 4 }
  0xf2   :  { %v65_v23 = vadd.f32 %v64_v22, %v63_v21 }
  0xf4   :  { %v66_v25 = vrot.slane %v65_v23, 2 }
  0xf6   :  { %v67_v26 = vadd.f32 %v66_v25, %v65_v23 }
  0xf8   :  { %v68_v28 = vrot.slane %v67_v26, 1 }
  0xfa   :  { %v69_v29 = vadd.f32 %v68_v28, %v67_v26 }
  0xfc   :  { %96 = vpush %v69_v29 }
  0xfd   :  { %98 = vpush %v80_v30 }
 0x12d   :  { %s97_s0 = spop %96 }
 0x12e   :  { %v82_v31 = vstv %s97_s0  ;;  %s99_s2 = spop %98 }
 0x12f   :  { %83 = vst [vmem:[%s182_s3] sm:$0x1] %v82_v31  ;;  %v84_v32 = vstv %s99_s2 }
 0x130   :  { %85 = vst [vmem:[%s183_s4] sm:$0x1] %v84_v32 }
 0x131   :  { %94 = vsyncpa [#allocation5], 1 }

</bundles_post_ra>
